<compile_context>
chip_gen: v6e
topology: v6e:2x2x1
jax: 0.10.0
libtpu: 0.0.40
codegen_flags: <defaults>
</compile_context>

<pallas_src>
import jax
import jax.numpy as jnp
from jax.experimental import pallas as pl
from jax.experimental.pallas import tpu as pltpu

LANE = 128     # TPU vreg lane width
SUBLANE = 8    # f32 sublane height


def _round_up(x, m):
    return ((x + m - 1) // m) * m


# ---------------------------------------------------------------------------
# Shared fused-MLP body: returns f32 logits for the resident batch block.
# MXU operands (x, W) may be bf16 (compute_dtype); accumulation, bias add and
# ReLU stay f32 (v5e has no bf16 VALU).
# ---------------------------------------------------------------------------
def _mlp_logits(x_ref, w1_ref, b1_ref, w2_ref, b2_ref, w3_ref, b3_ref):
    cd = w1_ref.dtype
    h = jnp.dot(x_ref[...], w1_ref[...], preferred_element_type=jnp.float32) + b1_ref[...]
    h = jnp.maximum(h, 0.0).astype(cd)
    h = jnp.dot(h, w2_ref[...], preferred_element_type=jnp.float32) + b2_ref[...]
    h = jnp.maximum(h, 0.0).astype(cd)
    return jnp.dot(h, w3_ref[...], preferred_element_type=jnp.float32) + b3_ref[...]


# ---------------------------------------------------------------------------
# Kernel A (nb == 1): everything in one launch, fully VMEM-resident.
# ---------------------------------------------------------------------------
def fused_mlp_softmax_kernel(x_ref, w1_ref, b1_ref, w2_ref, b2_ref, w3_ref,
                             b3_ref, o_ref):
    z = _mlp_logits(x_ref, w1_ref, b1_ref, w2_ref, b2_ref, w3_ref, b3_ref)
    # softmax over dim 0 (the batch axis), exactly nn.Softmax(dim=0)
    m = jnp.max(z, axis=0, keepdims=True)
    e = jnp.exp(z - m)
    s = jnp.sum(e, axis=0, keepdims=True)
    o_ref[...] = (e * pl.reciprocal(s, approx=False)).astype(o_ref.dtype)


# ---------------------------------------------------------------------------
# Kernel B1 (nb > 1): MLP -> logits block + per-block softmax partials.
#   grid = (nb,), "parallel"; weights/biases have constant index_maps so they
#   stay VMEM-resident across batch blocks.
#   Partials are lane-dense (SUBLANE, Cpad) blocks:
#     mp: per-block column max duplicated across the 8 sublanes,
#     sp: per-block column sum-exp in sublane 0, zeros elsewhere
#         (so a plain axis-0 sum in the merge kernel is exact).
# ---------------------------------------------------------------------------
def mlp_partials_kernel(x_ref, w1_ref, b1_ref, w2_ref, b2_ref, w3_ref, b3_ref,
                        z_ref, mp_ref, sp_ref):
    z = _mlp_logits(x_ref, w1_ref, b1_ref, w2_ref, b2_ref, w3_ref, b3_ref)
    z_ref[...] = z.astype(z_ref.dtype)

    m_blk = jnp.max(z, axis=0, keepdims=True)                       # (1, Cpad)
    s_blk = jnp.sum(jnp.exp(z - m_blk), axis=0, keepdims=True)      # (1, Cpad)

    mp_ref[...] = jnp.broadcast_to(m_blk, mp_ref.shape)
    sub = jax.lax.broadcasted_iota(jnp.int32, sp_ref.shape, 0)
    sp_ref[...] = jnp.where(sub == 0, jnp.broadcast_to(s_blk, sp_ref.shape), 0.0)


# ---------------------------------------------------------------------------
# Kernel B2 (nb > 1): merge the nb partials (log-sum-exp) and normalize the
# resident logits block. No cross-step state -> batch axis is "parallel".
# ---------------------------------------------------------------------------
def softmax_normalize_kernel(z_ref, mp_ref, sp_ref, o_ref):
    m_parts = mp_ref[...]                                   # (nb*SUBLANE, Cpad)
    s_parts = sp_ref[...]
    m_glob = jnp.max(m_parts, axis=0, keepdims=True)        # duplicates -> exact
    s_glob = jnp.sum(s_parts * jnp.exp(m_parts - m_glob), axis=0, keepdims=True)
    o_ref[...] = (jnp.exp(z_ref[...] - m_glob)
                  * pl.reciprocal(s_glob, approx=False)).astype(o_ref.dtype)


def discriminator_forward(x, params, *, batch_tile=512, compute_dtype=jnp.float32):
    """x: (B, input_dim) f32. params: (w1, b1, w2, b2, w3, b3), W stored (in, out).

    compute_dtype: MXU-operand dtype. jnp.bfloat16 recommended at scale on
    v6e/v7x (halves DMA bytes, bf16 MXU path); f32 kept as default for exact
    parity with the f32 reference at toy sizes.
    """
    w1, b1, w2, b2, w3, b3 = params
    B, D0 = x.shape
    D1, D2, C = w1.shape[1], w2.shape[1], w3.shape[1]
    D1p, D2p, Cp = _round_up(D1, LANE), _round_up(D2, LANE), _round_up(C, LANE)
    # NOTE: on v6e/v7x (256x256 MXU) prefer 256-multiples for the padded dims
    # once the real dims are large enough; 128 already fills v5e's 128-wide MXU.

    # Lane-dense zero padding of every layer's output width (exact through ReLU).
    w1p = jnp.zeros((D0, D1p), w1.dtype).at[:, :D1].set(w1)
    b1p = jnp.zeros((1, D1p), b1.dtype).at[:, :D1].set(b1)
    w2p = jnp.zeros((D1p, D2p), w2.dtype).at[:D1, :D2].set(w2)
    b2p = jnp.zeros((1, D2p), b2.dtype).at[:, :D2].set(b2)
    w3p = jnp.zeros((D2p, Cp), w3.dtype).at[:D2, :C].set(w3)
    b3p = jnp.zeros((1, Cp), b3.dtype).at[:, :C].set(b3)

    cd = jnp.dtype(compute_dtype)
    xc = x.astype(cd)
    w1c, w2c, w3c = w1p.astype(cd), w2p.astype(cd), w3p.astype(cd)

    # Batch tile: full batch if it fits one tile, else a sublane-aligned tile.
    TB = B if B <= batch_tile else batch_tile
    assert B % TB == 0, "batch must be divisible by the batch tile"
    assert TB == B or TB % SUBLANE == 0
    nb = B // TB

    # VMEM budget (double-buffered tiles + resident weights), capped for v7x's
    # 64 MiB physical VMEM. At scale, shrink batch_tile if this cap binds.
    # TODO(synk): single-buffer the constant-index weight blocks (pipeline_mode=pl.Buffered(1)) once validated on the target jax version.
    wsz = cd.itemsize
    est = (2 * ((D0 * D1p + D1p * D2p + D2p * Cp) * wsz + (D1p + D2p + Cp) * 4)
           + 2 * (TB * D0 * wsz + TB * Cp * 4 + 2 * SUBLANE * Cp * 4)
           + 2 * TB * max(D1p, D2p) * 4)
    vmem_limit = int(min(max(4 * est, 32 * 2**20), 48 * 2**20))

    mlp_flops = 2 * B * (D0 * D1p + D1p * D2p + D2p * Cp) + 8 * B * Cp
    mlp_bytes = (xc.nbytes + w1c.nbytes + w2c.nbytes + w3c.nbytes
                 + b1p.nbytes + b2p.nbytes + b3p.nbytes
                 + 4 * B * Cp + 2 * 4 * nb * SUBLANE * Cp)

    weight_args = (w1c, b1p, w2c, b2p, w3c, b3p)
    weight_specs = [
        pl.BlockSpec((D0, D1p), lambda i: (0, 0)),
        pl.BlockSpec((1, D1p), lambda i: (0, 0)),
        pl.BlockSpec((D1p, D2p), lambda i: (0, 0)),
        pl.BlockSpec((1, D2p), lambda i: (0, 0)),
        pl.BlockSpec((D2p, Cp), lambda i: (0, 0)),
        pl.BlockSpec((1, Cp), lambda i: (0, 0)),
    ]

    if nb == 1:
        # Single launch: MLP + dim-0 softmax on the fully resident batch block.
        out_pad = pl.pallas_call(
            fused_mlp_softmax_kernel,
            out_shape=jax.ShapeDtypeStruct((B, Cp), jnp.float32),
            grid_spec=pltpu.PrefetchScalarGridSpec(
                num_scalar_prefetch=0,
                grid=(1,),
                in_specs=[pl.BlockSpec((B, D0), lambda i: (0, 0))] + weight_specs,
                out_specs=pl.BlockSpec((B, Cp), lambda i: (0, 0)),
            ),
            compiler_params=pltpu.CompilerParams(
                dimension_semantics=("arbitrary",),
                vmem_limit_bytes=vmem_limit,
            ),
            cost_estimate=pl.CostEstimate(
                flops=mlp_flops, transcendentals=B * Cp, bytes_accessed=mlp_bytes),
        )(xc, *weight_args)
        return out_pad[:, :C]

    # --- Pass 1: MLP + per-block softmax partials (batch axis "parallel") ---
    logits, m_parts, s_parts = pl.pallas_call(
        mlp_partials_kernel,
        out_shape=[
            jax.ShapeDtypeStruct((B, Cp), jnp.float32),
            jax.ShapeDtypeStruct((nb * SUBLANE, Cp), jnp.float32),
            jax.ShapeDtypeStruct((nb * SUBLANE, Cp), jnp.float32),
        ],
        grid_spec=pltpu.PrefetchScalarGridSpec(
            num_scalar_prefetch=0,
            grid=(nb,),
            in_specs=[pl.BlockSpec((TB, D0), lambda i: (i, 0))] + weight_specs,
            out_specs=[
                pl.BlockSpec((TB, Cp), lambda i: (i, 0)),
                pl.BlockSpec((SUBLANE, Cp), lambda i: (i, 0)),
                pl.BlockSpec((SUBLANE, Cp), lambda i: (i, 0)),
            ],
        ),
        compiler_params=pltpu.CompilerParams(
            dimension_semantics=("parallel",),
            vmem_limit_bytes=vmem_limit,
        ),
        cost_estimate=pl.CostEstimate(
            flops=mlp_flops, transcendentals=B * Cp, bytes_accessed=mlp_bytes),
    )(xc, *weight_args)

    # --- Pass 2: merge partials + normalize (fully parallel over batch blocks) ---
    norm_bytes = 4 * (2 * B * Cp + 2 * nb * SUBLANE * Cp)
    out_pad = pl.pallas_call(
        softmax_normalize_kernel,
        out_shape=jax.ShapeDtypeStruct((B, Cp), jnp.float32),
        grid_spec=pltpu.PrefetchScalarGridSpec(
            num_scalar_prefetch=0,
            grid=(nb,),
            in_specs=[
                pl.BlockSpec((TB, Cp), lambda i: (i, 0)),
                pl.BlockSpec((nb * SUBLANE, Cp), lambda i: (0, 0)),
                pl.BlockSpec((nb * SUBLANE, Cp), lambda i: (0, 0)),
            ],
            out_specs=pl.BlockSpec((TB, Cp), lambda i: (i, 0)),
        ),
        compiler_params=pltpu.CompilerParams(
            dimension_semantics=("parallel",),
            vmem_limit_bytes=vmem_limit,
        ),
        cost_estimate=pl.CostEstimate(
            flops=6 * B * Cp,
            transcendentals=B * Cp + nb * SUBLANE * Cp,
            bytes_accessed=norm_bytes),
    )(logits, m_parts, s_parts)

    return out_pad[:, :C]


def init_params(key, input_dim, num_layers, num_categories):
    """PyTorch-Linear-like init: U(-1/sqrt(fan_in), 1/sqrt(fan_in)); W stored (in, out)."""
    dims = [input_dim // 2 ** c for c in range(num_layers)] + [num_categories]
    params = []
    for i in range(num_layers):
        fan_in, fan_out = dims[i], dims[i + 1]
        key, kw, kb = jax.random.split(key, 3)
        bound = 1.0 / jnp.sqrt(fan_in)
        w = jax.random.uniform(kw, (fan_in, fan_out), jnp.float32, -bound, bound)
        b = jax.random.uniform(kb, (1, fan_out), jnp.float32, -bound, bound)
        params += [w, b]
    assert num_layers == 3, "this script wires the 3-layer Discriminator"
    return tuple(params)


def reference_forward(x, params):
    """Pure-JAX reference (GradientReversal is identity in the forward pass)."""
    w1, b1, w2, b2, w3, b3 = params
    h = jnp.maximum(x @ w1 + b1, 0.0)
    h = jnp.maximum(h @ w2 + b2, 0.0)
    logits = h @ w3 + b3
    return jax.nn.softmax(logits, axis=0)  # dim=0 as in the PyTorch module


if __name__ == "__main__":
    # Discriminator(input_dim=32, num_layers=3, num_categories=4, lm=1.0)
    B, input_dim, num_layers, num_categories = 8, 32, 3, 4

    key = jax.random.PRNGKey(0)
    key, kx = jax.random.split(key)
    x = jax.random.normal(kx, (B, input_dim), jnp.float32)
    params = init_params(key, input_dim, num_layers, num_categories)

    # Toy size -> single fused launch path (nb == 1).
    out = jax.block_until_ready(discriminator_forward(x, params))
    ref = reference_forward(x, params)
    assert out.shape == (B, num_categories)
    assert jnp.allclose(out, ref, atol=1e-5, rtol=1e-5), "mismatch vs reference (fused path)"
    # softmax over dim=0 -> columns sum to 1
    assert jnp.allclose(jnp.sum(out, axis=0), jnp.ones((num_categories,)), atol=1e-5)

    # Also exercise the batch-tiled path (nb > 1): fused partials + parallel normalize.
    B2 = 512
    key, kx2 = jax.random.split(key)
    x2 = jax.random.normal(kx2, (B2, input_dim), jnp.float32)
    out2 = jax.block_until_ready(discriminator_forward(x2, params, batch_tile=256))
    ref2 = reference_forward(x2, params)
    assert out2.shape == (B2, num_categories)
    assert jnp.allclose(out2, ref2, atol=1e-5, rtol=1e-4), "mismatch vs reference (tiled path)"
    assert jnp.allclose(jnp.sum(out2, axis=0), jnp.ones((num_categories,)), atol=1e-4)

    print("KERNEL_OK")
</pallas_src>

<mosaic_0001>
module attributes {stable_mosaic.version = 11 : i64} {
  func.func @fused_mlp_softmax_kernel(%arg0: i32, %arg1: memref<8x32xf32, #tpu.memory_space<vmem>>, %arg2: memref<32x128xf32, #tpu.memory_space<vmem>>, %arg3: memref<1x128xf32, #tpu.memory_space<vmem>>, %arg4: memref<128x128xf32, #tpu.memory_space<vmem>>, %arg5: memref<1x128xf32, #tpu.memory_space<vmem>>, %arg6: memref<128x128xf32, #tpu.memory_space<vmem>>, %arg7: memref<1x128xf32, #tpu.memory_space<vmem>>, %arg8: memref<8x128xf32, #tpu.memory_space<vmem>>) attributes {dimension_semantics = [#tpu.dimension_semantics<arbitrary>], iteration_bounds = array<i64: 1>, scalar_prefetch = 0 : i64, scratch_operands = 0 : i64, tpu.core_type = #tpu.core_type<tc>, window_params = [{pipeline_mode = #tpu.pipeline_mode<synchronous>, transform_indices = @transform_0, window_bounds = array<i64: 8, 32>}, {pipeline_mode = #tpu.pipeline_mode<synchronous>, transform_indices = @transform_1, window_bounds = array<i64: 32, 128>}, {pipeline_mode = #tpu.pipeline_mode<synchronous>, transform_indices = @transform_2, window_bounds = array<i64: 1, 128>}, {pipeline_mode = #tpu.pipeline_mode<synchronous>, transform_indices = @transform_3, window_bounds = array<i64: 128, 128>}, {pipeline_mode = #tpu.pipeline_mode<synchronous>, transform_indices = @transform_4, window_bounds = array<i64: 1, 128>}, {pipeline_mode = #tpu.pipeline_mode<synchronous>, transform_indices = @transform_5, window_bounds = array<i64: 128, 128>}, {pipeline_mode = #tpu.pipeline_mode<synchronous>, transform_indices = @transform_6, window_bounds = array<i64: 1, 128>}, {pipeline_mode = #tpu.pipeline_mode<synchronous>, transform_indices = @transform_7, window_bounds = array<i64: 8, 128>}]} {
    %c0 = arith.constant 0 : index
    %c0_0 = arith.constant 0 : index
    %0 = vector.load %arg1[%c0, %c0_0] : memref<8x32xf32, #tpu.memory_space<vmem>>, vector<8x32xf32>
    %c0_1 = arith.constant 0 : index
    %c0_2 = arith.constant 0 : index
    %1 = vector.load %arg2[%c0_1, %c0_2] : memref<32x128xf32, #tpu.memory_space<vmem>>, vector<32x128xf32>
    %cst = arith.constant dense<0.000000e+00> : vector<8x128xf32>
    %2 = tpu.matmul %0, %1, %cst {dimension_numbers = #tpu.dot_dimension_numbers<[1], [0], [0], [1], [0, 0, 1, 1], [], []>} : vector<8x32xf32>, vector<32x128xf32>, vector<8x128xf32> -> vector<8x128xf32>
    %c0_3 = arith.constant 0 : index
    %c0_4 = arith.constant 0 : index
    %3 = vector.load %arg3[%c0_3, %c0_4] : memref<1x128xf32, #tpu.memory_space<vmem>>, vector<1x128xf32>
    %4 = vector.broadcast %3 : vector<1x128xf32> to vector<8x128xf32>
    %5 = arith.addf %2, %4 : vector<8x128xf32>
    %cst_5 = arith.constant 0.000000e+00 : f32
    %6 = vector.broadcast %cst_5 : f32 to vector<8x128xf32>
    %7 = arith.maximumf %5, %6 : vector<8x128xf32>
    %c0_6 = arith.constant 0 : index
    %c0_7 = arith.constant 0 : index
    %8 = vector.load %arg4[%c0_6, %c0_7] : memref<128x128xf32, #tpu.memory_space<vmem>>, vector<128x128xf32>
    %cst_8 = arith.constant dense<0.000000e+00> : vector<8x128xf32>
    %9 = tpu.matmul %7, %8, %cst_8 {dimension_numbers = #tpu.dot_dimension_numbers<[1], [0], [0], [1], [0, 0, 1, 1], [], []>} : vector<8x128xf32>, vector<128x128xf32>, vector<8x128xf32> -> vector<8x128xf32>
    %c0_9 = arith.constant 0 : index
    %c0_10 = arith.constant 0 : index
    %10 = vector.load %arg5[%c0_9, %c0_10] : memref<1x128xf32, #tpu.memory_space<vmem>>, vector<1x128xf32>
    %11 = vector.broadcast %10 : vector<1x128xf32> to vector<8x128xf32>
    %12 = arith.addf %9, %11 : vector<8x128xf32>
    %cst_11 = arith.constant 0.000000e+00 : f32
    %13 = vector.broadcast %cst_11 : f32 to vector<8x128xf32>
    %14 = arith.maximumf %12, %13 : vector<8x128xf32>
    %c0_12 = arith.constant 0 : index
    %c0_13 = arith.constant 0 : index
    %15 = vector.load %arg6[%c0_12, %c0_13] : memref<128x128xf32, #tpu.memory_space<vmem>>, vector<128x128xf32>
    %cst_14 = arith.constant dense<0.000000e+00> : vector<8x128xf32>
    %16 = tpu.matmul %14, %15, %cst_14 {dimension_numbers = #tpu.dot_dimension_numbers<[1], [0], [0], [1], [0, 0, 1, 1], [], []>} : vector<8x128xf32>, vector<128x128xf32>, vector<8x128xf32> -> vector<8x128xf32>
    %c0_15 = arith.constant 0 : index
    %c0_16 = arith.constant 0 : index
    %17 = vector.load %arg7[%c0_15, %c0_16] : memref<1x128xf32, #tpu.memory_space<vmem>>, vector<1x128xf32>
    %18 = vector.broadcast %17 : vector<1x128xf32> to vector<8x128xf32>
    %19 = arith.addf %16, %18 : vector<8x128xf32>
    %cst_17 = arith.constant dense<0xFF800000> : vector<128xf32>
    %20 = vector.multi_reduction <maximumf>, %19, %cst_17 [0] : vector<8x128xf32> to vector<128xf32>
    %21 = vector.shape_cast %20 : vector<128xf32> to vector<1x128xf32>
    %22 = vector.broadcast %21 : vector<1x128xf32> to vector<8x128xf32>
    %23 = arith.subf %19, %22 : vector<8x128xf32>
    %24 = math.exp %23 : vector<8x128xf32>
    %cst_18 = arith.constant dense<0.000000e+00> : vector<128xf32>
    %25 = vector.multi_reduction <add>, %24, %cst_18 [0] : vector<8x128xf32> to vector<128xf32>
    %26 = vector.shape_cast %25 : vector<128xf32> to vector<1x128xf32>
    %27 = tpu.reciprocal %26 : vector<1x128xf32> -> vector<1x128xf32>
    %28 = vector.broadcast %27 : vector<1x128xf32> to vector<8x128xf32>
    %29 = arith.mulf %24, %28 : vector<8x128xf32>
    %c0_19 = arith.constant 0 : index
    %c0_20 = arith.constant 0 : index
    %30 = vector.load %arg8[%c0_19, %c0_20] : memref<8x128xf32, #tpu.memory_space<vmem>>, vector<8x128xf32>
    tpu.vector_store %arg8[%c0_19, %c0_20], %29 {strides = array<i32>} : memref<8x128xf32, #tpu.memory_space<vmem>>, vector<8x128xf32>,
    return
  }
  func.func @transform_0(%arg0: i32) -> (i32, i32) {
    %c0_i32 = arith.constant 0 : i32
    %c0_i32_0 = arith.constant 0 : i32
    %c0_i32_1 = arith.constant 0 : i32
    return %c0_i32, %c0_i32_0 : i32, i32
  }
  func.func @transform_1(%arg0: i32) -> (i32, i32) {
    %c0_i32 = arith.constant 0 : i32
    %c0_i32_0 = arith.constant 0 : i32
    %c0_i32_1 = arith.constant 0 : i32
    return %c0_i32, %c0_i32_0 : i32, i32
  }
  func.func @transform_2(%arg0: i32) -> (i32, i32) {
    %c0_i32 = arith.constant 0 : i32
    %c0_i32_0 = arith.constant 0 : i32
    %c0_i32_1 = arith.constant 0 : i32
    return %c0_i32, %c0_i32_0 : i32, i32
  }
  func.func @transform_3(%arg0: i32) -> (i32, i32) {
    %c0_i32 = arith.constant 0 : i32
    %c0_i32_0 = arith.constant 0 : i32
    %c0_i32_1 = arith.constant 0 : i32
    return %c0_i32, %c0_i32_0 : i32, i32
  }
  func.func @transform_4(%arg0: i32) -> (i32, i32) {
    %c0_i32 = arith.constant 0 : i32
    %c0_i32_0 = arith.constant 0 : i32
    %c0_i32_1 = arith.constant 0 : i32
    return %c0_i32, %c0_i32_0 : i32, i32
  }
  func.func @transform_5(%arg0: i32) -> (i32, i32) {
    %c0_i32 = arith.constant 0 : i32
    %c0_i32_0 = arith.constant 0 : i32
    %c0_i32_1 = arith.constant 0 : i32
    return %c0_i32, %c0_i32_0 : i32, i32
  }
  func.func @transform_6(%arg0: i32) -> (i32, i32) {
    %c0_i32 = arith.constant 0 : i32
    %c0_i32_0 = arith.constant 0 : i32
    %c0_i32_1 = arith.constant 0 : i32
    return %c0_i32, %c0_i32_0 : i32, i32
  }
  func.func @transform_7(%arg0: i32) -> (i32, i32) {
    %c0_i32 = arith.constant 0 : i32
    %c0_i32_0 = arith.constant 0 : i32
    %c0_i32_1 = arith.constant 0 : i32
    return %c0_i32, %c0_i32_0 : i32, i32
  }
}

</mosaic_0001>

<bundles_post_ra>
// kernel: tpu_custom_call.1
= control target key start
LH: loop header
LB: loop body
LE: loop exit
PB: predicated region body
PF: predicated region fallthrough
CT: control target
= control target key end

     0   :  { %12 = vsyncpa [#allocation3], 0  ;;  %s758_s0 = inlined_call_operand.hbm [shape: f32[8,32], index: 0, kind: input, shape index: {}]   ;;  %s759_s1 = inlined_call_operand.hbm [shape: f32[32,128], index: 1, kind: input, shape index: {}]   ;;  %s760_s2 = inlined_call_operand.vmem [shape: f32[1,128], index: 2, kind: input, shape index: {}]   ;;  %s761_s3 = inlined_call_operand.hbm [shape: f32[128,128], index: 3, kind: input, shape index: {}]   ;;  %s762_s4 = inlined_call_operand.vmem [shape: f32[1,128], index: 4, kind: input, shape index: {}]   ;;  %s763_s5 = inlined_call_operand.hbm [shape: f32[128,128], index: 5, kind: input, shape index: {}]   ;;  %s764_s6 = inlined_call_operand.vmem [shape: f32[1,128], index: 6, kind: input, shape index: {}]   ;;  %s765_s7 = inlined_call_operand.hbm [shape: f32[8,128], index: 7, kind: output, shape index: {}]  }
   0x1   :  { %13 = vsyncpa [#allocation6], 0 }
   0x2   :  { %14 = vsyncpa [#allocation9], 0 }
   0x3   :  { %15 = vsyncpa [#allocation4], 0  ;;  %s634_s24 = smov [#allocation5]  }
   0x4   :  { %s31_s25 = sshll.u32 %s634_s24, 4  ;;  %s32_s25 = int_to_ptr.vmem [resolvable:$true] %s31_s25 }
   0x5   :  { %s534_s26 = scalar_lea.vmem %s32_s25, 512  ;;  %p539_p1 = scmp.lt.s32.totalorder %s32_s25, %s32_s25 }
   0x6   :  { %p535_p0 = scmp.ne.s32.totalorder %s32_s25, %s534_s26  ;;  %p540_p2 = scmp.lt.s32.totalorder %s534_s26, %s534_s26 }
   0x8   :  { %p541_p3 = por %p540_p2, %p539_p1 }
   0xa   :  { %p542_p4 = pnand %p541_p3, %p535_p0 }
   0xc   :  { %545 = shalt.err (!%p542_p4)
}
   0xd   :  { %s635_s27 = smov 128   ;;  %s636_s28 = smov 8  }
   0xe   :  { %37 = dma.hbm_to_vmem [thread:$0]  %s759_s1, 512, %s32_s25, [#allocation6], %s635_s27, %s635_s27, %s636_s28  }
   0xf   :  { %s637_s8 = smov [#allocation2]   ;;  %s638_s10 = smov [#allocation7]  }
  0x10   :  { %s22_s9 = sshll.u32 %s637_s8, 4  ;;  %s45_s11 = sshll.u32 %s638_s10, 4  ;;  %s23_s9 = int_to_ptr.vmem [resolvable:$true] %s22_s9  ;;  %s46_s11 = int_to_ptr.vmem [resolvable:$true] %s45_s11 }
  0x11   :  { %s554_s12 = scalar_lea.vmem %s23_s9, 128  ;;  %p559_p6 = scmp.lt.s32.totalorder %s23_s9, %s23_s9 }
  0x12   :  { %p555_p5 = scmp.ne.s32.totalorder %s23_s9, %s554_s12  ;;  %p560_p7 = scmp.lt.s32.totalorder %s554_s12, %s554_s12 }
  0x14   :  { %p561_p8 = por %p560_p7, %p559_p6 }
  0x16   :  { %p562_p9 = pnand %p561_p8, %p555_p5 }
  0x18   :  { %565 = shalt.err (!%p562_p9)
}
  0x19   :  { %25 = dma.hbm_to_vmem [thread:$0]  %s758_s0, 128, %s23_s9, [#allocation3]  }
  0x1a   :  { %s574_s15 = scalar_lea.vmem %s46_s11, 2048  ;;  %p579_p11 = scmp.lt.s32.totalorder %s46_s11, %s46_s11 }
  0x1b   :  { %p575_p10 = scmp.ne.s32.totalorder %s46_s11, %s574_s15  ;;  %p580_p12 = scmp.lt.s32.totalorder %s574_s15, %s574_s15 }
  0x1d   :  { %p581_p13 = por %p580_p12, %p579_p11 }
  0x1f   :  { %p582_p0 = pnand %p581_p13, %p575_p10 }
  0x21   :  { %585 = shalt.err (!%p582_p0)
}
  0x22   :  { %51 = dma.hbm_to_vmem [thread:$0]  %s761_s3, 2048, %s46_s11, [#allocation6], %s635_s27, %s635_s27, %s636_s28  }
  0x23   :  { %s639_s17 = smov [#allocation8]  }
  0x24   :  { %s59_s18 = sshll.u32 %s639_s17, 4  ;;  %s60_s18 = int_to_ptr.vmem [resolvable:$true] %s59_s18 }
  0x25   :  { %s594_s19 = scalar_lea.vmem %s60_s18, 2048  ;;  %p599_p2 = scmp.lt.s32.totalorder %s60_s18, %s60_s18 }
  0x26   :  { %p595_p1 = scmp.ne.s32.totalorder %s60_s18, %s594_s19  ;;  %p600_p3 = scmp.lt.s32.totalorder %s594_s19, %s594_s19 }
  0x28   :  { %p601_p4 = por %p600_p3, %p599_p2 }
  0x2a   :  { %p602_p5 = pnand %p601_p4, %p595_p1 }
  0x2c   :  { %605 = shalt.err (!%p602_p5)
}
  0x2d   :  { %65 = dma.hbm_to_vmem [thread:$0]  %s763_s5, 2048, %s60_s18, [#allocation9], %s635_s27, %s635_s27, %s636_s28  }
  0x2e   :  { %626 = dma.done.wait [#allocation3], 128  }
  0x2f   :  { %627 = vsyncadd [#allocation3], 4294967168 }
  0x30   :  { %628 = dma.done.wait [#allocation6], 2560  }
  0x31   :  { %629 = vsyncadd [#allocation6], 4294964736 }
  0x32   :  { %630 = dma.done.wait [#allocation9], 2048  }
  0x33   :  { %631 = vsyncadd [#allocation9], 4294965248  ;;  %v640_v0 = vmov 0.0   ;;  %vm641_vm0 = vmmov 0   ;;  %v84_v1 = vld [vmem:[#allocation5 + $0x18] sm:$0xff]  ;;  %v83_v2 = vld [vmem:[#allocation5 + $0x10] sm:$0xff] }
  0x34   :  { %432 = vmatprep.subr.mxu0 %v640_v0  ;;  %440 = vmatprep.mubr.msk.f32.mxu0 %vm641_vm0, %v640_v0  ;;  %v182_v3 = vld [vmem:[#allocation7 + $0x78] sm:$0xff]  ;;  %v82_v4 = vld [vmem:[#allocation5 + $0x8] sm:$0xff]  ;;  %v181_v5 = vld [vmem:[#allocation7 + $0x70] sm:$0xff]  ;;  %vm92_vm1 = vcmask 261120  }
  0x35   :  { %443 = vmatprep.subr.mxu1 %v640_v0  ;;  %475 = vmatprep.mubr.msk.f32.mxu1 %vm641_vm0, %v640_v0  ;;  %v180_v6 = vld [vmem:[#allocation7 + $0x68] sm:$0xff]  ;;  %v81_v7 = vld [vmem:[#allocation5] sm:$0xff]  ;;  %v80_v8 = vld [vmem:[#allocation2] sm:$0xff] }
  0x36   :  { %433 = vmatpush3.msra.mxu0 %v84_v1  ;;  %444 = vmatpush3.msra.mxu1 %v182_v3  ;;  %v179_v9 = vld [vmem:[#allocation7 + $0x60] sm:$0xff]  ;;  %v178_v10 = vld [vmem:[#allocation7 + $0x58] sm:$0xff]  ;;  %v177_v11 = vld [vmem:[#allocation7 + $0x50] sm:$0xff] }
  0x37   :  { %434 = vmatprep.subr.mxu0 %v640_v0  ;;  %445 = vmatprep.subr.mxu1 %v640_v0  ;;  %v176_v12 = vld [vmem:[#allocation7 + $0x48] sm:$0xff]  ;;  %v175_v13 = vld [vmem:[#allocation7 + $0x40] sm:$0xff]  ;;  %v174_v14 = vld [vmem:[#allocation7 + $0x38] sm:$0xff] }
  0x38   :  { %435 = vmatpush3.msra.mxu0 %v83_v2  ;;  %446 = vmatpush3.msra.mxu1 %v181_v5  ;;  %v173_v15 = vld [vmem:[#allocation7 + $0x30] sm:$0xff]  ;;  %v172_v16 = vld [vmem:[#allocation7 + $0x28] sm:$0xff]  ;;  %v171_v17 = vld [vmem:[#allocation7 + $0x20] sm:$0xff] }
  0x39   :  { %436 = vmatprep.subr.mxu0 %v640_v0  ;;  %447 = vmatprep.subr.mxu1 %v640_v0  ;;  %v170_v18 = vld [vmem:[#allocation7 + $0x18] sm:$0xff]  ;;  %v169_v19 = vld [vmem:[#allocation7 + $0x10] sm:$0xff]  ;;  %v168_v20 = vld [vmem:[#allocation7 + $0x8] sm:$0xff] }
  0x3a   :  { %437 = vmatpush3.msra.mxu0 %v82_v4  ;;  %448 = vmatpush3.msra.mxu1 %v180_v6  ;;  %v167_v21 = vld [vmem:[#allocation7] sm:$0xff]  ;;  %v276_v22 = vld [vmem:[#allocation8 + $0x78] sm:$0xff]  ;;  %v275_v23 = vld [vmem:[#allocation8 + $0x70] sm:$0xff] }
  0x3b   :  { %438 = vmatprep.subr.mxu0 %v640_v0  ;;  %449 = vmatprep.subr.mxu1 %v640_v0  ;;  %v274_v24 = vld [vmem:[#allocation8 + $0x68] sm:$0xff]  ;;  %v273_v25 = vld [vmem:[#allocation8 + $0x60] sm:$0xff]  ;;  %v272_v26 = vld [vmem:[#allocation8 + $0x58] sm:$0xff] }
  0x3c   :  { %439 = vmatpush3.msra.mxu0 %v81_v7  ;;  %450 = vmatpush3.msra.mxu1 %v179_v9  ;;  %v271_v27 = vld [vmem:[#allocation8 + $0x50] sm:$0xff]  ;;  %v270_v28 = vld [vmem:[#allocation8 + $0x48] sm:$0xff]  ;;  %v269_v29 = vld [vmem:[#allocation8 + $0x40] sm:$0xff] }
  0x3d   :  { %441 = vmatmul.mubr.msk.f32.vlgmr.msra.gmra.mxu0 %vm92_vm1, %v80_v8  ;;  %451 = vmatprep.subr.mxu1 %v640_v0  ;;  %v268_v30 = vld [vmem:[#allocation8 + $0x38] sm:$0xff]  ;;  %v267_v31 = vld [vmem:[#allocation8 + $0x30] sm:$0xff]  ;;  %v266_v32 = vld [vmem:[#allocation8 + $0x28] sm:$0xff] }
  0x3e   :  { %478 = vmatprep.subr.mxu0 %v640_v0  ;;  %452 = vmatpush3.msra.mxu1 %v178_v10  ;;  %v265_v33 = vld [vmem:[#allocation8 + $0x20] sm:$0xff]  ;;  %v264_v34 = vld [vmem:[#allocation8 + $0x18] sm:$0xff]  ;;  %v263_v40 = vld [vmem:[#allocation8 + $0x10] sm:$0xff] }
  0x3f   :  { %510 = vmatprep.mubr.msk.f32.mxu0 %vm641_vm0, %v640_v0  ;;  %453 = vmatprep.subr.mxu1 %v640_v0  ;;  %v389_v35 = vld [vmem:[%s760_s2] ss:$0 sm:$0xff]  ;;  %v262_v41 = vld [vmem:[#allocation8 + $0x8] sm:$0xff]  ;;  %v261_v42 = vld [vmem:[#allocation8] sm:$0xff] }
  0x40   :  { %454 = vmatpush3.msra.mxu1 %v177_v11  ;;  %479 = vmatpush3.msra.mxu0 %v276_v22  ;;  %v391_v43 = vld [vmem:[%s762_s4] ss:$0 sm:$0xff]  ;;  %s642_s4 = smov [#allocation10]  }
  0x41   :  { %455 = vmatprep.subr.mxu1 %v640_v0  ;;  %480 = vmatprep.subr.mxu0 %v640_v0  ;;  %v392_v48 = vld [vmem:[%s764_s6] ss:$0 sm:$0xff]  ;;  %s378_s6 = sshll.u32 %s642_s4, 4  ;;  %s379_s6 = int_to_ptr.vmem [resolvable:$true] %s378_s6 }
  0x42   :  { %456 = vmatpush3.msra.mxu1 %v176_v12  ;;  %481 = vmatpush3.msra.mxu0 %v275_v23  ;;  %s606_s24 = scalar_lea.vmem %s379_s6, 128  ;;  %p611_p7 = scmp.lt.s32.totalorder %s379_s6, %s379_s6 }
  0x43   :  { %457 = vmatprep.subr.mxu1 %v640_v0  ;;  %482 = vmatprep.subr.mxu0 %v640_v0  ;;  %p607_p6 = scmp.ne.s32.totalorder %s379_s6, %s606_s24  ;;  %p612_p8 = scmp.lt.s32.totalorder %s606_s24, %s606_s24 }
  0x44   :  { %458 = vmatpush3.msra.mxu1 %v175_v13  ;;  %483 = vmatpush3.msra.mxu0 %v274_v24 }
  0x45   :  { %459 = vmatprep.subr.mxu1 %v640_v0  ;;  %484 = vmatprep.subr.mxu0 %v640_v0  ;;  %p613_p9 = por %p612_p8, %p611_p7 }
  0x46   :  { %460 = vmatpush3.msra.mxu1 %v174_v14  ;;  %485 = vmatpush3.msra.mxu0 %v273_v25 }
  0x47   :  { %461 = vmatprep.subr.mxu1 %v640_v0  ;;  %486 = vmatprep.subr.mxu0 %v640_v0  ;;  %p614_p10 = pnand %p613_p9, %p607_p6 }
  0x48   :  { %462 = vmatpush3.msra.mxu1 %v173_v15  ;;  %487 = vmatpush3.msra.mxu0 %v272_v26 }
  0x49   :  { %463 = vmatprep.subr.mxu1 %v640_v0  ;;  %488 = vmatprep.subr.mxu0 %v640_v0 }
  0x4a   :  { %464 = vmatpush3.msra.mxu1 %v172_v16  ;;  %489 = vmatpush3.msra.mxu0 %v271_v27 }
  0x4b   :  { %465 = vmatprep.subr.mxu1 %v640_v0  ;;  %490 = vmatprep.subr.mxu0 %v640_v0 }
  0x4c   :  { %466 = vmatpush3.msra.mxu1 %v171_v17  ;;  %491 = vmatpush3.msra.mxu0 %v270_v28 }
  0x4d   :  { %467 = vmatprep.subr.mxu1 %v640_v0  ;;  %492 = vmatprep.subr.mxu0 %v640_v0 }
  0x4e   :  { %468 = vmatpush3.msra.mxu1 %v170_v18  ;;  %493 = vmatpush3.msra.mxu0 %v269_v29 }
  0x4f   :  { %469 = vmatprep.subr.mxu1 %v640_v0  ;;  %494 = vmatprep.subr.mxu0 %v640_v0 }
  0x50   :  { %470 = vmatpush3.msra.mxu1 %v169_v19  ;;  %495 = vmatpush3.msra.mxu0 %v268_v30 }
  0x51   :  { %471 = vmatprep.subr.mxu1 %v640_v0  ;;  %496 = vmatprep.subr.mxu0 %v640_v0 }
  0x52   :  { %472 = vmatpush3.msra.mxu1 %v168_v20  ;;  %497 = vmatpush3.msra.mxu0 %v267_v31 }
  0x53   :  { %473 = vmatprep.subr.mxu1 %v640_v0  ;;  %498 = vmatprep.subr.mxu0 %v640_v0 }
  0x54   :  { %474 = vmatpush3.msra.mxu1 %v167_v21  ;;  %499 = vmatpush3.msra.mxu0 %v266_v32 }
  0x55   :  { %500 = vmatprep.subr.mxu0 %v640_v0 }
  0x56   :  { %501 = vmatpush3.msra.mxu0 %v265_v33 }
  0x57   :  { %502 = vmatprep.subr.mxu0 %v640_v0 }
  0x58   :  { %503 = vmatpush3.msra.mxu0 %v264_v34 }
  0x59   :  { %504 = vmatprep.subr.mxu0 %v640_v0 }
  0x5a   :  { %505 = vmatpush3.msra.mxu0 %v263_v40 }
  0x5b   :  { %506 = vmatprep.subr.mxu0 %v640_v0 }
  0x5c   :  { %507 = vmatpush3.msra.mxu0 %v262_v41 }
  0x5d   :  { %508 = vmatprep.subr.mxu0 %v640_v0 }
  0x5e   :  { %509 = vmatpush3.msra.mxu0 %v261_v42 }
  0xfd   :  { %v162_v36 = vpop.f32.mrf.mxu0 }
  0xfe   :  { %v163_v37 = vadd.f32 %v389_v35, %v162_v36 }
  0xff   :  { %v442_v38 = vpop.f32.mrf.mxu0 }
 0x100   :  { %v166_v39 = vmax.f32 %v163_v37, 0.0 }
 0x102   :  { %476 = vmatmul.mubr.f32.vlgmr.msra.gmra.mxu1 %v166_v39 }
 0x1c2   :  { %v256_v44 = vpop.f32.mrf.mxu1 }
 0x1c3   :  { %v257_v45 = vadd.f32 %v391_v43, %v256_v44 }
 0x1c4   :  { %v477_v46 = vpop.f32.mrf.mxu1 }
 0x1c5   :  { %v260_v47 = vmax.f32 %v257_v45, 0.0 }
 0x1c7   :  { %511 = vmatmul.mubr.f32.vlgmr.msra.gmra.mxu0 %v260_v47 }
 0x287   :  { %v350_v49 = vpop.f32.mrf.mxu0 }
 0x288   :  { %v351_v50 = vadd.f32 %v392_v48, %v350_v49 }
 0x289   :  { %v512_v51 = vpop.f32.mrf.mxu0 }
 0x28a   :  { %v354_v52 = vrot.slane %v351_v50, 4 }
 0x28c   :  { %v355_v53 = vmax.f32 %v351_v50, %v354_v52 }
 0x28e   :  { %v356_v54 = vrot.slane %v355_v53, 2 }
 0x290   :  { %v357_v55 = vmax.f32 %v355_v53, %v356_v54 }
 0x292   :  { %v358_v56 = vrot.slane %v357_v55, 1 }
 0x294   :  { %v359_v57 = vmax.f32 %v357_v55, %v358_v56 }
 0x296   :  { %v360_v58 = vsub.f32 %v351_v50, %v359_v57 }
 0x298   :  { %v361_v59 = vmul.f32 1.442695, %v360_v58 }
 0x29a   :  { %522 = vpow2.f32 %v361_v59 }
 0x2a7   :  { %v523_v60 = vpop.eup %522 }
 0x2a8   :  { %v363_v61 = vrot.slane %v523_v60, 4 }
 0x2aa   :  { %v364_v62 = vadd.f32 %v523_v60, %v363_v61 }
 0x2ac   :  { %v365_v63 = vrot.slane %v364_v62, 2 }
 0x2ae   :  { %v366_v0 = vadd.f32 %v365_v63, %v364_v62 }
 0x2b0   :  { %v367_v1 = vrot.slane %v366_v0, 1 }
 0x2b2   :  { %v368_v2 = vadd.f32 %v367_v1, %v366_v0 }
 0x2b4   :  { %524 = vrcp.f32 %v368_v2 }
 0x2c1   :  { %v525_v3 = vpop.eup %524 }
 0x2c2   :  { %v370_v4 = vmul.f32 %v525_v3, %v523_v60 }
 0x2c4   :  { %371 = vst [vmem:[#allocation10] sm:$0xff] %v370_v4 }
 0x2c5   :  { %617 = shalt.err (!%p614_p10)
}
 0x2c6   :  { %381 = dma.vmem_to_hbm [thread:$0]  %s379_s6, 128, %s765_s7, [#allocation4]  }
 0x2c7   :  { %632 = dma.done.wait [#allocation4], 128  }
 0x2c8   :  { %633 = vsyncadd [#allocation4], 4294967168 }
 0x2c9   :  { %385 = vsyncpa [#allocation3], 1 }
 0x2ca   :  { %386 = vsyncpa [#allocation6], 1 }
 0x2cb   :  { %387 = vsyncpa [#allocation9], 1 }
 0x2cc   :  { %388 = vsyncpa [#allocation4], 1 }

</bundles_post_ra>
